<compile_context>
chip_gen: v7x
topology: tpu7x:2x2x1
jax: 0.10.0
libtpu: 0.0.40
codegen_flags: <defaults>
</compile_context>

<pallas_src>
import jax
import jax.numpy as jnp
from jax import lax
from jax.experimental import pallas as pl
from jax.experimental.pallas import tpu as pltpu

NUM_CLASS = 11
NC_PAD = 128  # classifier output padded to a full lane tile inside the kernel


def _round_up(x, m):
    return (x + m - 1) // m * m


def _padded_bytes(a):
    """Physical VMEM bytes of an array after (8, 128) sublane/lane padding."""
    shape = a.shape
    lead = 1
    for d in shape[:-2]:
        lead *= d
    sub = shape[-2] if len(shape) >= 2 else 1
    lan = shape[-1] if len(shape) >= 1 else 1
    return lead * _round_up(sub, 8) * _round_up(lan, 128) * a.dtype.itemsize


def _pick_chunk(l1, cap=256):
    """Conv2 row-chunk length: largest divisor of L1 not exceeding `cap`."""
    if l1 <= cap:
        return l1
    for lc in range(cap, 0, -1):
        if l1 % lc == 0:
            return lc
    return 1


def _per_sample_vmem(L, C1, C2, K1, LC):
    """Rough per-batch-element physical VMEM (lane-padded) for one grid step."""
    lane = lambda c: _round_up(c, 128)
    L1 = L // 2
    b = 2 * L * lane(K1) * 4                      # xcol1 input tile (double-buffered)
    b += L * lane(C1) * 4                         # conv1 activations (f32)
    b += _round_up(L1 + 2, 8) * lane(C1) * 2      # conv2 halo scratch (bf16)
    b += LC * lane(3 * C1) * 2                    # conv2 im2col chunk (bf16)
    b += LC * lane(C2) * 4                        # conv2 output chunk (f32)
    b += 4 * lane(C2) * 4                         # running max / pooled / fc temps
    return b


def _pick_batch_tile(n, per_sample_bytes, budget_bytes=6 << 20):
    """Largest batch tile whose activations fit ~budget of VMEM. The output block's
    sublane dim must be a multiple of 8 or equal the full batch, so prefer those."""
    max_tb = max(1, budget_bytes // max(per_sample_bytes, 1))
    if n <= max_tb:
        return n
    for tb in range(min(max_tb, n), 7, -1):
        if n % tb == 0 and tb % 8 == 0:
            return tb
    return n  # fall back to a single untiled batch block


def _vmem_limit_bytes(weights, tb, per_sample_bytes):
    wbytes = sum(_padded_bytes(w) for w in weights)
    need = (wbytes
            + tb * per_sample_bytes
            + 2 * _round_up(tb, 8) * NC_PAD * 4   # double-buffered output tile
            + (8 << 20))                          # headroom for compiler scratch
    return int(min(max(need, 32 << 20), 48 << 20))  # stay below v7x's 64 MiB VMEM


# ----------------------------------------------------------------------------
# Fused kernel for one batch tile: conv1+ReLU+pool, conv2+ReLU+pool+adaptive-max
# (fused running max, chunked over L1), fc1+ReLU, fc2.
# ----------------------------------------------------------------------------
def _make_kernel(TB, L, K1, C1, C2, LC, nchunks):
    L1 = L // 2

    def kernel(xcol1_ref, w1_ref, b1_ref, w2_ref, b2_ref,
               wf1_ref, bf1_ref, wf2_ref, bf2_ref, o_ref, pad2_ref):
        # ---- conv1 (Cin -> C1, k=3, pad=1) + ReLU: one MXU matmul. The im2col is
        # built in the wrapper, so there is no lane-sparse halo buffer in-kernel.
        xcol1 = xcol1_ref[...].reshape(TB * L, K1)
        h1 = jnp.dot(xcol1, w1_ref[...], preferred_element_type=jnp.float32)
        h1 = jnp.maximum(h1 + b1_ref[...], 0.0)                     # (TB*L, C1)

        # ---- MaxPool1d(2): disjoint row pairs; L is even so pairs never straddle
        # batch elements.
        h1p = jnp.max(h1.reshape(TB * L1, 2, C1), axis=1)           # (TB*L1, C1)

        # ---- conv2 zero-halo buffer in bf16 (halves VMEM + store traffic).
        # Only the two halo rows are zeroed; the interior is overwritten.
        pad2_ref[:, 0:1, :] = jnp.zeros((TB, 1, C1), jnp.bfloat16)
        pad2_ref[:, L1 + 1:L1 + 2, :] = jnp.zeros((TB, 1, C1), jnp.bfloat16)
        pad2_ref[:, 1:L1 + 1, :] = h1p.reshape(TB, L1, C1).astype(jnp.bfloat16)

        w2 = w2_ref[...]
        b2 = b2_ref[...]

        # TODO(synk): replace the lane-concat im2col below with XLU roll / scratch
        # writes if relayout copies ever show up as the bottleneck; the single
        # K = 3*C1 contraction is kept either way.
        def conv2_chunk_max(r0):
            t0 = pad2_ref[:, pl.ds(r0 + 0, LC), :]
            t1 = pad2_ref[:, pl.ds(r0 + 1, LC), :]
            t2 = pad2_ref[:, pl.ds(r0 + 2, LC), :]
            xcol2 = jnp.concatenate([t0, t1, t2], axis=2).reshape(TB * LC, 3 * C1)
            h2 = jnp.dot(xcol2, w2, preferred_element_type=jnp.float32)
            h2 = jnp.maximum(h2 + b2, 0.0)                          # (TB*LC, C2)
            # MaxPool1d(2) followed by AdaptiveMaxPool1d(1) == max over all conv2
            # positions, so the global max folds into the conv2 epilogue and the
            # full (rows, C2) activation is never materialized.
            return jnp.max(h2.reshape(TB, LC, C2), axis=1)          # (TB, C2)

        mx = jnp.full((TB, C2), -jnp.inf, jnp.float32)
        if nchunks <= 8:      # short sequences: fully unrolled, static offsets
            for c in range(nchunks):
                mx = jnp.maximum(mx, conv2_chunk_max(c * LC))
        else:                 # long sequences: rolled loop, bounded live ranges
            mx = lax.fori_loop(
                0, nchunks,
                lambda c, m: jnp.maximum(m, conv2_chunk_max(c * LC)),
                mx)

        # ---- classifier: Linear(512,256)+ReLU, Linear(256,num_class). bf16 MXU
        # operands, f32 accumulation / bias / ReLU.
        h3 = jnp.dot(mx.astype(jnp.bfloat16), wf1_ref[...],
                     preferred_element_type=jnp.float32)
        h3 = jnp.maximum(h3 + bf1_ref[...], 0.0)                    # (TB, H)
        o_ref[...] = (jnp.dot(h3.astype(jnp.bfloat16), wf2_ref[...],
                              preferred_element_type=jnp.float32)
                      + bf2_ref[...])

    return kernel


# ----------------------------------------------------------------------------
# Wrapper: batch-tiled pallas_call with pipelined input tiles and VMEM-resident
# weights.
# ----------------------------------------------------------------------------
def vgg_forward(x_ncl, p, num_class=NUM_CLASS):
    """x_ncl: (N, C_in, L) PyTorch-layout input; p: packed params (pack_params)."""
    N, Cin, L = x_ncl.shape
    assert L % 4 == 0, "two MaxPool1d(2) stages assume L divisible by 4"
    K1 = p["w1"].shape[0]           # 3 * Cin
    C1 = p["b1"].shape[1]
    C2 = p["b2"].shape[1]
    L1 = L // 2

    # NCL -> NLC, then conv1 im2col in the wrapper (cheap XLA op): the kernel sees
    # one (N, L, 3*Cin) operand instead of a lane-sparse halo scratch + copies.
    x = jnp.transpose(x_ncl, (0, 2, 1)).astype(jnp.float32)
    xp = jnp.pad(x, ((0, 0), (1, 1), (0, 0)))
    xcol1 = jnp.concatenate(
        [xp[:, 0:L, :], xp[:, 1:L + 1, :], xp[:, 2:L + 2, :]], axis=-1)  # (N,L,3*Cin)

    LC = _pick_chunk(L1)
    nchunks = L1 // LC
    per_sample = _per_sample_vmem(L, C1, C2, K1, LC)
    TB = _pick_batch_tile(N, per_sample)
    grid = (N // TB,)
    L1pad = _round_up(L1 + 2, 8)    # sublane-aligned halo scratch

    weights = (p["w1"], p["b1"], p["w2"], p["b2"],
               p["wf1"], p["bf1"], p["wf2"], p["bf2"])
    # Constant index maps -> weights are fetched once and stay VMEM-resident.
    w_specs = [pl.BlockSpec(w.shape, lambda i: (0, 0)) for w in weights]

    kernel = _make_kernel(TB, L, K1, C1, C2, LC, nchunks)

    out_pad = pl.pallas_call(
        kernel,
        out_shape=jax.ShapeDtypeStruct((N, NC_PAD), jnp.float32),
        grid=grid,
        in_specs=[pl.BlockSpec((TB, L, K1), lambda i: (i, 0, 0))] + w_specs,
        out_specs=pl.BlockSpec((TB, NC_PAD), lambda i: (i, 0)),
        scratch_shapes=[pltpu.VMEM((TB, L1pad, C1), jnp.bfloat16)],  # conv2 halo
        compiler_params=pltpu.CompilerParams(
            dimension_semantics=("parallel",),     # megacore split on v7x
            vmem_limit_bytes=_vmem_limit_bytes(weights, TB, per_sample)),
    )(xcol1, *weights)
    return out_pad[:, :num_class]


# ----------------------------------------------------------------------------
# Parameters (deterministic, synthetic).
# ----------------------------------------------------------------------------
def init_params(key, c_in=4, num_class=NUM_CLASS):
    """PyTorch-like parameter layouts."""
    ks = jax.random.split(key, 8)

    def nrm(k, shape, scale):
        return scale * jax.random.normal(k, shape, jnp.float32)

    return {
        # conv weights (K, C_in, C_out); biases (1, C_out)
        "w_conv1": nrm(ks[0], (3, c_in, 64), 0.1),
        "b_conv1": nrm(ks[1], (1, 64), 0.01),
        "w_conv2": nrm(ks[2], (3, 64, 512), 0.05),
        "b_conv2": nrm(ks[3], (1, 512), 0.01),
        # linear weights (in, out); biases (1, out)
        "w_fc1": nrm(ks[4], (512, 256), 0.03),
        "b_fc1": nrm(ks[5], (1, 256), 0.01),
        "w_fc2": nrm(ks[6], (256, num_class), 0.05),
        "b_fc2": nrm(ks[7], (1, num_class), 0.01),
    }


def pack_params(raw, num_class=NUM_CLASS):
    """One-time repack into kernel-ready layouts: im2col conv weights, bf16 cast of
    the large MXU operands (conv2 / fc1 / fc2), fc2 output dim zero-padded to a
    full 128-lane tile so the kernel never emits masked partial stores."""
    k1, cin, c1 = raw["w_conv1"].shape
    k2, _, c2 = raw["w_conv2"].shape
    h = raw["w_fc1"].shape[1]
    wf2 = jnp.zeros((h, NC_PAD), jnp.float32).at[:, :num_class].set(raw["w_fc2"])
    bf2 = jnp.zeros((1, NC_PAD), jnp.float32).at[:, :num_class].set(raw["b_fc2"])
    return {
        "w1": raw["w_conv1"].reshape(k1 * cin, c1),                      # f32 (tiny K)
        "b1": raw["b_conv1"],
        "w2": raw["w_conv2"].reshape(k2 * c1, c2).astype(jnp.bfloat16),  # bf16 MXU
        "b2": raw["b_conv2"],
        "wf1": raw["w_fc1"].astype(jnp.bfloat16),                        # bf16 MXU
        "bf1": raw["b_fc1"],
        "wf2": wf2.astype(jnp.bfloat16),                                 # bf16 MXU
        "bf2": bf2,
    }


# ----------------------------------------------------------------------------
# Pure-JAX f32 reference (PyTorch semantics) for validation.
# ----------------------------------------------------------------------------
def ref_forward(x_ncl, raw):
    x = jnp.transpose(x_ncl, (0, 2, 1)).astype(jnp.float32)     # (N, L, Cin)

    def conv_relu(h, w, b):                                     # w: (K, Cin, Cout)
        Lh = h.shape[1]
        hp = jnp.pad(h, ((0, 0), (1, 1), (0, 0)))
        acc = sum(jnp.einsum("nlc,co->nlo", hp[:, k:k + Lh, :], w[k])
                  for k in range(w.shape[0]))
        return jnp.maximum(acc + b, 0.0)

    def pool2(h):                                               # MaxPool1d(2)
        n, l, c = h.shape
        return jnp.max(h.reshape(n, l // 2, 2, c), axis=2)

    h = pool2(conv_relu(x, raw["w_conv1"], raw["b_conv1"]))
    h = pool2(conv_relu(h, raw["w_conv2"], raw["b_conv2"]))
    pooled = jnp.max(h, axis=1)                                 # AdaptiveMaxPool1d(1)
    h = jnp.maximum(pooled @ raw["w_fc1"] + raw["b_fc1"], 0.0)
    return h @ raw["w_fc2"] + raw["b_fc2"]


if __name__ == "__main__":
    key = jax.random.PRNGKey(0)
    k_params, k_x = jax.random.split(key)

    raw = init_params(k_params, c_in=4, num_class=NUM_CLASS)
    params = pack_params(raw, num_class=NUM_CLASS)

    # PyTorch-style input: (N, C, L) = (2, 4, 16)
    x = jax.random.normal(k_x, (2, 4, 16), jnp.float32)

    out = jax.jit(vgg_forward)(x, params)
    out = jax.block_until_ready(out)

    assert out.shape == (2, NUM_CLASS), out.shape
    assert out.dtype == jnp.float32

    # Loose-tolerance check vs. the pure-JAX f32 reference (kernel uses bf16 MXU
    # operands for conv2 / fc1 / fc2, so ~1% deviations are expected and fine).
    ref = ref_forward(x, raw)
    max_err = float(jnp.max(jnp.abs(out - ref)))
    assert max_err < 0.1, f"max abs error vs reference: {max_err}"

    print("KERNEL_OK")
</pallas_src>

<mosaic_0001>
module attributes {stable_mosaic.version = 11 : i64} {
  func.func @kernel(%arg0: i32, %arg1: memref<2x16x12xf32, #tpu.memory_space<vmem>>, %arg2: memref<12x64xf32, #tpu.memory_space<vmem>>, %arg3: memref<1x64xf32, #tpu.memory_space<vmem>>, %arg4: memref<192x512xbf16, #tpu.memory_space<vmem>>, %arg5: memref<1x512xf32, #tpu.memory_space<vmem>>, %arg6: memref<512x256xbf16, #tpu.memory_space<vmem>>, %arg7: memref<1x256xf32, #tpu.memory_space<vmem>>, %arg8: memref<256x128xbf16, #tpu.memory_space<vmem>>, %arg9: memref<1x128xf32, #tpu.memory_space<vmem>>, %arg10: memref<2x128xf32, #tpu.memory_space<vmem>>, %arg11: memref<2x16x64xbf16, #tpu.memory_space<vmem>>) attributes {dimension_semantics = [#tpu.dimension_semantics<parallel>], iteration_bounds = array<i64: 1>, scalar_prefetch = 0 : i64, scratch_operands = 1 : i64, tpu.core_type = #tpu.core_type<tc>, window_params = [{transform_indices = @transform_0, window_bounds = array<i64: 2, 16, 12>}, {pipeline_mode = #tpu.pipeline_mode<synchronous>, transform_indices = @transform_1, window_bounds = array<i64: 12, 64>}, {pipeline_mode = #tpu.pipeline_mode<synchronous>, transform_indices = @transform_2, window_bounds = array<i64: 1, 64>}, {pipeline_mode = #tpu.pipeline_mode<synchronous>, transform_indices = @transform_3, window_bounds = array<i64: 192, 512>}, {pipeline_mode = #tpu.pipeline_mode<synchronous>, transform_indices = @transform_4, window_bounds = array<i64: 1, 512>}, {pipeline_mode = #tpu.pipeline_mode<synchronous>, transform_indices = @transform_5, window_bounds = array<i64: 512, 256>}, {pipeline_mode = #tpu.pipeline_mode<synchronous>, transform_indices = @transform_6, window_bounds = array<i64: 1, 256>}, {pipeline_mode = #tpu.pipeline_mode<synchronous>, transform_indices = @transform_7, window_bounds = array<i64: 256, 128>}, {pipeline_mode = #tpu.pipeline_mode<synchronous>, transform_indices = @transform_8, window_bounds = array<i64: 1, 128>}, {transform_indices = @transform_9, window_bounds = array<i64: 2, 128>}]} {
    %c0 = arith.constant 0 : index
    %c0_0 = arith.constant 0 : index
    %c0_1 = arith.constant 0 : index
    %0 = vector.load %arg1[%c0, %c0_0, %c0_1] : memref<2x16x12xf32, #tpu.memory_space<vmem>>, vector<2x16x12xf32>
    %1 = vector.shape_cast %0 : vector<2x16x12xf32> to vector<32x12xf32>
    %c0_2 = arith.constant 0 : index
    %c0_3 = arith.constant 0 : index
    %2 = vector.load %arg2[%c0_2, %c0_3] : memref<12x64xf32, #tpu.memory_space<vmem>>, vector<12x64xf32>
    %cst = arith.constant dense<0.000000e+00> : vector<32x64xf32>
    %3 = tpu.matmul %1, %2, %cst {dimension_numbers = #tpu.dot_dimension_numbers<[1], [0], [0], [1], [0, 0, 1, 1], [], []>} : vector<32x12xf32>, vector<12x64xf32>, vector<32x64xf32> -> vector<32x64xf32>
    %c0_4 = arith.constant 0 : index
    %c0_5 = arith.constant 0 : index
    %4 = vector.load %arg3[%c0_4, %c0_5] : memref<1x64xf32, #tpu.memory_space<vmem>>, vector<1x64xf32>
    %5 = vector.broadcast %4 : vector<1x64xf32> to vector<32x64xf32>
    %6 = arith.addf %3, %5 : vector<32x64xf32>
    %cst_6 = arith.constant 0.000000e+00 : f32
    %7 = vector.broadcast %cst_6 : f32 to vector<32x64xf32>
    %8 = arith.maximumf %6, %7 : vector<32x64xf32>
    %9 = vector.shape_cast %8 : vector<32x64xf32> to vector<16x2x64xf32>
    %cst_7 = arith.constant dense<0xFF800000> : vector<16x64xf32>
    %10 = vector.multi_reduction <maximumf>, %9, %cst_7 [1] : vector<16x2x64xf32> to vector<16x64xf32>
    %cst_8 = arith.constant 0.000000e+00 : bf16
    %11 = vector.broadcast %cst_8 : bf16 to vector<2x1x64xbf16>
    %c0_9 = arith.constant 0 : index
    %c0_10 = arith.constant 0 : index
    %c0_11 = arith.constant 0 : index
    %12 = vector.load %arg11[%c0_9, %c0_10, %c0_11] : memref<2x16x64xbf16, #tpu.memory_space<vmem>>, vector<2x1x64xbf16>
    tpu.vector_store %arg11[%c0_9, %c0_10, %c0_11], %11 {strides = array<i32>} : memref<2x16x64xbf16, #tpu.memory_space<vmem>>, vector<2x1x64xbf16>,
    %cst_12 = arith.constant 0.000000e+00 : bf16
    %13 = vector.broadcast %cst_12 : bf16 to vector<2x1x64xbf16>
    %c0_13 = arith.constant 0 : index
    %c9 = arith.constant 9 : index
    %c0_14 = arith.constant 0 : index
    %14 = vector.load %arg11[%c0_13, %c9, %c0_14] : memref<2x16x64xbf16, #tpu.memory_space<vmem>>, vector<2x1x64xbf16>
    tpu.vector_store %arg11[%c0_13, %c9, %c0_14], %13 {strides = array<i32>} : memref<2x16x64xbf16, #tpu.memory_space<vmem>>, vector<2x1x64xbf16>,
    %15 = vector.shape_cast %10 : vector<16x64xf32> to vector<2x8x64xf32>
    %16 = arith.truncf %15 : vector<2x8x64xf32> to vector<2x8x64xbf16>
    %c0_15 = arith.constant 0 : index
    %c1 = arith.constant 1 : index
    %c0_16 = arith.constant 0 : index
    %17 = vector.load %arg11[%c0_15, %c1, %c0_16] : memref<2x16x64xbf16, #tpu.memory_space<vmem>>, vector<2x8x64xbf16>
    tpu.vector_store %arg11[%c0_15, %c1, %c0_16], %16 {strides = array<i32>} : memref<2x16x64xbf16, #tpu.memory_space<vmem>>, vector<2x8x64xbf16>,
    %c0_17 = arith.constant 0 : index
    %c0_18 = arith.constant 0 : index
    %18 = vector.load %arg4[%c0_17, %c0_18] : memref<192x512xbf16, #tpu.memory_space<vmem>>, vector<192x512xbf16>
    %c0_19 = arith.constant 0 : index
    %c0_20 = arith.constant 0 : index
    %19 = vector.load %arg5[%c0_19, %c0_20] : memref<1x512xf32, #tpu.memory_space<vmem>>, vector<1x512xf32>
    %cst_21 = arith.constant 0xFF800000 : f32
    %20 = vector.broadcast %cst_21 : f32 to vector<2x512xf32>
    %c0_22 = arith.constant 0 : index
    %c0_23 = arith.constant 0 : index
    %c0_24 = arith.constant 0 : index
    %21 = vector.load %arg11[%c0_22, %c0_23, %c0_24] : memref<2x16x64xbf16, #tpu.memory_space<vmem>>, vector<2x8x64xbf16>
    %c0_25 = arith.constant 0 : index
    %c1_26 = arith.constant 1 : index
    %c0_27 = arith.constant 0 : index
    %22 = vector.load %arg11[%c0_25, %c1_26, %c0_27] : memref<2x16x64xbf16, #tpu.memory_space<vmem>>, vector<2x8x64xbf16>
    %c0_28 = arith.constant 0 : index
    %c2 = arith.constant 2 : index
    %c0_29 = arith.constant 0 : index
    %23 = vector.load %arg11[%c0_28, %c2, %c0_29] : memref<2x16x64xbf16, #tpu.memory_space<vmem>>, vector<2x8x64xbf16>
    %24 = tpu.concatenate %21, %22, %23 in 2 : vector<2x8x64xbf16>, vector<2x8x64xbf16>, vector<2x8x64xbf16> -> vector<2x8x192xbf16>
    %25 = vector.shape_cast %24 : vector<2x8x192xbf16> to vector<16x192xbf16>
    %cst_30 = arith.constant dense<0.000000e+00> : vector<16x512xf32>
    %26 = tpu.matmul %25, %18, %cst_30 {dimension_numbers = #tpu.dot_dimension_numbers<[1], [0], [0], [1], [0, 0, 1, 1], [], []>} : vector<16x192xbf16>, vector<192x512xbf16>, vector<16x512xf32> -> vector<16x512xf32>
    %27 = vector.broadcast %19 : vector<1x512xf32> to vector<16x512xf32>
    %28 = arith.addf %26, %27 : vector<16x512xf32>
    %cst_31 = arith.constant 0.000000e+00 : f32
    %29 = vector.broadcast %cst_31 : f32 to vector<16x512xf32>
    %30 = arith.maximumf %28, %29 : vector<16x512xf32>
    %31 = vector.shape_cast %30 : vector<16x512xf32> to vector<2x8x512xf32>
    %cst_32 = arith.constant dense<0xFF800000> : vector<2x512xf32>
    %32 = vector.multi_reduction <maximumf>, %31, %cst_32 [1] : vector<2x8x512xf32> to vector<2x512xf32>
    %33 = arith.maximumf %20, %32 : vector<2x512xf32>
    %34 = arith.truncf %33 : vector<2x512xf32> to vector<2x512xbf16>
    %c0_33 = arith.constant 0 : index
    %c0_34 = arith.constant 0 : index
    %35 = vector.load %arg6[%c0_33, %c0_34] : memref<512x256xbf16, #tpu.memory_space<vmem>>, vector<512x256xbf16>
    %cst_35 = arith.constant dense<0.000000e+00> : vector<2x256xf32>
    %36 = tpu.matmul %34, %35, %cst_35 {dimension_numbers = #tpu.dot_dimension_numbers<[1], [0], [0], [1], [0, 0, 1, 1], [], []>} : vector<2x512xbf16>, vector<512x256xbf16>, vector<2x256xf32> -> vector<2x256xf32>
    %c0_36 = arith.constant 0 : index
    %c0_37 = arith.constant 0 : index
    %37 = vector.load %arg7[%c0_36, %c0_37] : memref<1x256xf32, #tpu.memory_space<vmem>>, vector<1x256xf32>
    %38 = vector.broadcast %37 : vector<1x256xf32> to vector<2x256xf32>
    %39 = arith.addf %36, %38 : vector<2x256xf32>
    %cst_38 = arith.constant 0.000000e+00 : f32
    %40 = vector.broadcast %cst_38 : f32 to vector<2x256xf32>
    %41 = arith.maximumf %39, %40 : vector<2x256xf32>
    %42 = arith.truncf %41 : vector<2x256xf32> to vector<2x256xbf16>
    %c0_39 = arith.constant 0 : index
    %c0_40 = arith.constant 0 : index
    %43 = vector.load %arg8[%c0_39, %c0_40] : memref<256x128xbf16, #tpu.memory_space<vmem>>, vector<256x128xbf16>
    %cst_41 = arith.constant dense<0.000000e+00> : vector<2x128xf32>
    %44 = tpu.matmul %42, %43, %cst_41 {dimension_numbers = #tpu.dot_dimension_numbers<[1], [0], [0], [1], [0, 0, 1, 1], [], []>} : vector<2x256xbf16>, vector<256x128xbf16>, vector<2x128xf32> -> vector<2x128xf32>
    %c0_42 = arith.constant 0 : index
    %c0_43 = arith.constant 0 : index
    %45 = vector.load %arg9[%c0_42, %c0_43] : memref<1x128xf32, #tpu.memory_space<vmem>>, vector<1x128xf32>
    %46 = vector.broadcast %45 : vector<1x128xf32> to vector<2x128xf32>
    %47 = arith.addf %44, %46 : vector<2x128xf32>
    %c0_44 = arith.constant 0 : index
    %c0_45 = arith.constant 0 : index
    %48 = vector.load %arg10[%c0_44, %c0_45] : memref<2x128xf32, #tpu.memory_space<vmem>>, vector<2x128xf32>
    tpu.vector_store %arg10[%c0_44, %c0_45], %47 {strides = array<i32>} : memref<2x128xf32, #tpu.memory_space<vmem>>, vector<2x128xf32>,
    return
  }
  func.func @transform_0(%arg0: i32) -> (i32, i32, i32) {
    %c0_i32 = arith.constant 0 : i32
    %c0_i32_0 = arith.constant 0 : i32
    %c0_i32_1 = arith.constant 0 : i32
    return %arg0, %c0_i32, %c0_i32_0 : i32, i32, i32
  }
  func.func @transform_1(%arg0: i32) -> (i32, i32) {
    %c0_i32 = arith.constant 0 : i32
    %c0_i32_0 = arith.constant 0 : i32
    %c0_i32_1 = arith.constant 0 : i32
    return %c0_i32, %c0_i32_0 : i32, i32
  }
  func.func @transform_2(%arg0: i32) -> (i32, i32) {
    %c0_i32 = arith.constant 0 : i32
    %c0_i32_0 = arith.constant 0 : i32
    %c0_i32_1 = arith.constant 0 : i32
    return %c0_i32, %c0_i32_0 : i32, i32
  }
  func.func @transform_3(%arg0: i32) -> (i32, i32) {
    %c0_i32 = arith.constant 0 : i32
    %c0_i32_0 = arith.constant 0 : i32
    %c0_i32_1 = arith.constant 0 : i32
    return %c0_i32, %c0_i32_0 : i32, i32
  }
  func.func @transform_4(%arg0: i32) -> (i32, i32) {
    %c0_i32 = arith.constant 0 : i32
    %c0_i32_0 = arith.constant 0 : i32
    %c0_i32_1 = arith.constant 0 : i32
    return %c0_i32, %c0_i32_0 : i32, i32
  }
  func.func @transform_5(%arg0: i32) -> (i32, i32) {
    %c0_i32 = arith.constant 0 : i32
    %c0_i32_0 = arith.constant 0 : i32
    %c0_i32_1 = arith.constant 0 : i32
    return %c0_i32, %c0_i32_0 : i32, i32
  }
  func.func @transform_6(%arg0: i32) -> (i32, i32) {
    %c0_i32 = arith.constant 0 : i32
    %c0_i32_0 = arith.constant 0 : i32
    %c0_i32_1 = arith.constant 0 : i32
    return %c0_i32, %c0_i32_0 : i32, i32
  }
  func.func @transform_7(%arg0: i32) -> (i32, i32) {
    %c0_i32 = arith.constant 0 : i32
    %c0_i32_0 = arith.constant 0 : i32
    %c0_i32_1 = arith.constant 0 : i32
    return %c0_i32, %c0_i32_0 : i32, i32
  }
  func.func @transform_8(%arg0: i32) -> (i32, i32) {
    %c0_i32 = arith.constant 0 : i32
    %c0_i32_0 = arith.constant 0 : i32
    %c0_i32_1 = arith.constant 0 : i32
    return %c0_i32, %c0_i32_0 : i32, i32
  }
  func.func @transform_9(%arg0: i32) -> (i32, i32) {
    %c0_i32 = arith.constant 0 : i32
    %c0_i32_0 = arith.constant 0 : i32
    return %arg0, %c0_i32 : i32, i32
  }
}

</mosaic_0001>

<bundles_post_ra>
// kernel: vgg_forward.1
= control target key start
LH: loop header
LB: loop body
LE: loop exit
PB: predicated region body
PF: predicated region fallthrough
CT: control target
= control target key end

     0   :  { %14 = vsyncpa [#allocation4], 0  ;;  %s2411_s0 = inlined_call_operand.vmem [shape: f32[2,16,12], index: 0, kind: input, shape index: {}]   ;;  %s2412_s1 = inlined_call_operand.vmem [shape: f32[12,64], index: 1, kind: input, shape index: {}]   ;;  %s2413_s2 = inlined_call_operand.vmem [shape: f32[1,64], index: 2, kind: input, shape index: {}]   ;;  %s2414_s3 = inlined_call_operand.hbm [shape: bf16[192,512], index: 3, kind: input, shape index: {}]   ;;  %s2415_s4 = inlined_call_operand.vmem [shape: f32[1,512], index: 4, kind: input, shape index: {}]   ;;  %s2416_s5 = inlined_call_operand.hbm [shape: bf16[512,256], index: 5, kind: input, shape index: {}]   ;;  %s2417_s6 = inlined_call_operand.vmem [shape: f32[1,256], index: 6, kind: input, shape index: {}]   ;;  %s2418_s7 = inlined_call_operand.vmem [shape: bf16[256,128], index: 7, kind: input, shape index: {}]   ;;  %s2419_s8 = inlined_call_operand.vmem [shape: f32[1,128], index: 8, kind: input, shape index: {}]   ;;  %s2420_s9 = inlined_call_operand.hbm [shape: f32[2,128], index: 9, kind: output, shape index: {}]  }
   0x1   :  { %15 = vsyncpa [#allocation7], 0 }
   0x2   :  { %16 = vsyncpa [#allocation5], 0  ;;  %s2144_s30 = smov [#allocation3]   ;;  %s2072_s13 = scalar_lea.hbm %s2414_s3, 6144 }
   0x3   :  { %s28_s10 = sshll.u32 %s2144_s30, 4  ;;  %p2073_p0 = scmp.ne.s32.totalorder %s2414_s3, %s2072_s13  ;;  %s29_s10 = int_to_ptr.vmem [resolvable:$true] %s28_s10 }
   0x4   :  { %p2076_p1 = scmp.lt.u32.totalorder %s2072_s13, %s2414_s3 }
   0x6   :  { %p2078_p2 = pnand %p2076_p1, %p2073_p0 }
   0x8   :  { %2081 = shalt.err (!%p2078_p2)
}
   0x9   :  { %s2082_s18 = scalar_lea.vmem %s29_s10, 6144  ;;  %p2087_p4 = scmp.lt.s32.totalorder %s29_s10, %s29_s10 }
   0xa   :  { %p2083_p3 = scmp.ne.s32.totalorder %s29_s10, %s2082_s18  ;;  %p2088_p5 = scmp.lt.s32.totalorder %s2082_s18, %s2082_s18 }
   0xc   :  { %p2089_p6 = por %p2088_p5, %p2087_p4 }
   0xe   :  { %p2090_p7 = pnand %p2089_p6, %p2083_p3 }
  0x10   :  { %2093 = shalt.err (!%p2090_p7)
}
  0x11   :  { %s2145_s19 = smov 256   ;;  %s2146_s20 = smov 16  }
  0x12   :  { %34 = dma.hbm_to_vmem [thread:$0]  %s2414_s3, 6144, %s29_s10, [#allocation4], %s2145_s19, %s2145_s19, %s2146_s20  }
  0x13   :  { %s2147_s23 = smov [#allocation6]   ;;  %s2094_s27 = scalar_lea.hbm %s2416_s5, 8192 }
  0x14   :  { %s42_s24 = sshll.u32 %s2147_s23, 4  ;;  %p2095_p8 = scmp.ne.s32.totalorder %s2416_s5, %s2094_s27  ;;  %s43_s24 = int_to_ptr.vmem [resolvable:$true] %s42_s24 }
  0x15   :  { %p2098_p9 = scmp.lt.u32.totalorder %s2094_s27, %s2416_s5 }
  0x17   :  { %p2100_p10 = pnand %p2098_p9, %p2095_p8 }
  0x19   :  { %2103 = shalt.err (!%p2100_p10)
}
  0x1a   :  { %s2104_s12 = scalar_lea.vmem %s43_s24, 8192  ;;  %p2109_p12 = scmp.lt.s32.totalorder %s43_s24, %s43_s24 }
  0x1b   :  { %p2105_p11 = scmp.ne.s32.totalorder %s43_s24, %s2104_s12  ;;  %p2110_p13 = scmp.lt.s32.totalorder %s2104_s12, %s2104_s12 }
  0x1d   :  { %p2111_p0 = por %p2110_p13, %p2109_p12 }
  0x1f   :  { %p2112_p1 = pnand %p2111_p0, %p2105_p11 }
  0x21   :  { %2115 = shalt.err (!%p2112_p1)
}
  0x22   :  { %s2148_s3 = smov 128   ;;  %s2149_s10 = smov 8  }
  0x23   :  { %48 = dma.hbm_to_vmem [thread:$0]  %s2416_s5, 8192, %s43_s24, [#allocation7], %s2148_s3, %s2148_s3, %s2149_s10  }
  0x24   :  { %2138 = dma.done.wait [#allocation4], 6144  }
  0x25   :  { %2139 = vsyncadd [#allocation4], 4294961152 }
  0x26   :  { %2140 = dma.done.wait [#allocation7], 8192  }
  0x27   :  { %2141 = vsyncadd [#allocation7], 4294959104  ;;  %vm88_vm0 = vcmask 1043456   ;;  %vm75_vm1 = vcmask 97280   ;;  %vm2150_vm2 = vmmov 1   ;;  %v66_v0 = vld [vmem:[%s2412_s1] sm:$0xff]  ;;  %v189_v39 = vlaneseq }
  0x28   :  { %vm1867_vm3 = vmpackc.low %vm88_vm0, %vm2150_vm2  ;;  %v67_v1 = vld [vmem:[%s2412_s1 + $0x8] sm:$0xf]  ;;  %v62_v2 = vld [vmem:[%s2411_s0] sm:$0xff]  ;;  %vm382_vm4 = vcmask 516096   ;;  %vm383_vm5 = vsmask.f32 256 }
  0x29   :  { %v1866_v3 = vpack.c.bf16 %v67_v1, %v66_v0  ;;  %1860 = vmatprep.mubr.msk.f32.mxu0 %vm75_vm1, %v62_v2  ;;  %v63_v4 = vld [vmem:[%s2411_s0 + $0x8] sm:$0xff]  ;;  %v64_v5 = vld [vmem:[%s2411_s0 + $0x10] sm:$0xff]  ;;  %v65_v6 = vld [vmem:[%s2411_s0 + $0x18] sm:$0xff]  ;;  %vm391_vm6 = vcmask 520196   ;;  %vm392_vm8 = vsmask.f32 7954 }
  0x2a   :  { %v385_v7 = vld [vmem:[#allocation2] sm:$0x1]  ;;  %vm384_vm7 = vmand %vm382_vm4, %vm383_vm5  ;;  %v394_v8 = vld [vmem:[#allocation2] sm:$0x10]  ;;  %v2151_v37 = vmov 1983009808  }
  0x2b   :  { %1868 = vmatprep.subr.msk.bf16.mxu0 %vm1867_vm3, %v1866_v3  ;;  %v386_v9 = vsel %vm384_vm7, 0, %v385_v7  ;;  %vm393_vm9 = vmand %vm391_vm6, %vm392_vm8  ;;  %v388_v11 = vld [vmem:[#allocation2 + $0x8] sm:$0x1]  ;;  %v397_v12 = vld [vmem:[#allocation2 + $0x8] sm:$0x10]  ;;  %v187_v38 = vunpack.c.l.s4 %v2151_v37  ;;  %v2246_v41 = vshrl.u32 %v189_v39, 7 }
  0x2c   :  { %1871 = vmatpush3.bf16.msk.msra.mxu0 %vm1867_vm3, %v1866_v3  ;;  %387 = vst [vmem:[#allocation2] sm:$0x1] %v386_v9  ;;  %v395_v10 = vsel %vm393_vm9, 0, %v394_v8  ;;  %v389_v13 = vsel %vm384_vm7, 0, %v388_v11  ;;  %v398_v14 = vsel %vm393_vm9, 0, %v397_v12  ;;  %vm269_vm10 = vcmask 517120  }
  0x2d   :  { %396 = vst [vmem:[#allocation2] sm:$0x10] %v395_v10  ;;  %390 = vst [vmem:[#allocation2 + $0x8] sm:$0x1] %v389_v13  ;;  %v1888_v15 = vld [vmem:[#allocation3] ss:$16 sps:$4 sm:$0xff]   ;;  %v188_v40 = vunpack.c.0.s8 %v187_v38 }
  0x2e   :  { %399 = vst [vmem:[#allocation2 + $0x8] sm:$0x10] %v398_v14  ;;  %v1890_v16 = vld [vmem:[#allocation3 + $0x4] ss:$16 sps:$4 sm:$0xff]   ;;  %v1891_v18 = vld [vmem:[#allocation3 + $0x20] ss:$16 sps:$4 sm:$0xff]  }
  0x2f   :  { %1861 = vmatmul.mubr.msk.f32.vlgmr.msra.gmra.mrb[0].mxu0 %vm75_vm1, %v63_v4  ;;  %v1893_v17 = vld [vmem:[#allocation3 + $0x24] ss:$16 sps:$4 sm:$0xff]   ;;  %836 = vmatprep.subr.bf16.mxu0 %v1890_v16  ;;  %v1894_v20 = vld [vmem:[#allocation3 + $0x40] ss:$16 sps:$4 sm:$0xff]   ;;  %v2255_v45 = vsub.s32 %v188_v40, %v2246_v41  ;;  %vm448_vm11 = vcmask 1042434   ;;  %vm450_vm12 = vcmask 1043459  }
  0x30   :  { %1863 = vmatprep.mubr.msk.f32.mxu0 %vm75_vm1, %v64_v5  ;;  %837 = vmatpush1.bf16.msra.mxu0 %v1888_v15  ;;  %v1896_v19 = vld [vmem:[#allocation3 + $0x44] ss:$16 sps:$4 sm:$0xff]   ;;  %v1897_v22 = vld [vmem:[#allocation3 + $0x60] ss:$16 sps:$4 sm:$0xff]   ;;  %vm452_vm13 = vcmask 1044484   ;;  %vm454_vm14 = vcmask 1045509  }
  0x31   :  { %838 = vmatprep.subr.bf16.mxu0 %v1893_v17  ;;  %v1899_v21 = vld [vmem:[#allocation3 + $0x64] ss:$16 sps:$4 sm:$0xff]   ;;  %v1900_v24 = vld [vmem:[#allocation3 + $0x80] ss:$16 sps:$4 sm:$0xff]   ;;  %vm456_vm15 = vcmask 1046534   ;;  %vm458_vm0 = vcmask 1047559  }
  0x32   :  { %v1902_v23 = vld [vmem:[#allocation3 + $0x84] ss:$16 sps:$4 sm:$0xff]   ;;  %v1903_v26 = vld [vmem:[#allocation3 + $0xa0] ss:$16 sps:$4 sm:$0xff]   ;;  %vm471_vm2 = vsmask.f32 4354 }
  0x33   :  { %1864 = vmatmul.mubr.msk.f32.gmra.mrb[2].mxu0 %vm75_vm1, %v65_v6  ;;  %v1905_v25 = vld [vmem:[#allocation3 + $0xa4] ss:$16 sps:$4 sm:$0xff]   ;;  %v1906_v28 = vld [vmem:[#allocation3 + $0xc0] ss:$16 sps:$4 sm:$0xff]   ;;  %vm470_vm1 = vcmask 520192   ;;  %vm556_vm4 = vcmask 523264  }
  0x34   :  { %839 = vmatpush1.bf16.msra.mxu0 %v1891_v18  ;;  %v1908_v27 = vld [vmem:[#allocation3 + $0xc4] ss:$16 sps:$4 sm:$0xff]   ;;  %v1909_v30 = vld [vmem:[#allocation3 + $0xe0] ss:$16 sps:$4 sm:$0xff]   ;;  %vm2296_vm3 = vmand %vm470_vm1, %vm471_vm2  ;;  %vm1078_vm5 = vcmask 1041409   ;;  %s2153_s13 = smov [#allocation8]  }
  0x35   :  { %840 = vmatprep.subr.bf16.mxu0 %v1896_v19  ;;  %v1911_v29 = vld [vmem:[#allocation3 + $0xe4] ss:$16 sps:$4 sm:$0xff]   ;;  %v1912_v32 = vld [vmem:[#allocation3 + $0x100] ss:$16 sps:$4 sm:$0xff]   ;;  %s1679_s14 = sshll.u32 %s2153_s13, 4  ;;  %s1680_s14 = int_to_ptr.vmem [resolvable:$true] %s1679_s14 }
  0x36   :  { %v1914_v31 = vld [vmem:[#allocation3 + $0x104] ss:$16 sps:$4 sm:$0xff]   ;;  %v1915_v34 = vld [vmem:[#allocation3 + $0x120] ss:$16 sps:$4 sm:$0xff]   ;;  %s2116_s15 = scalar_lea.vmem %s1680_s14, 32  ;;  %p2121_p3 = scmp.lt.s32.totalorder %s1680_s14, %s1680_s14 }
  0x37   :  { %v1917_v33 = vld [vmem:[#allocation3 + $0x124] ss:$16 sps:$4 sm:$0xff]   ;;  %v1918_v36 = vld [vmem:[#allocation3 + $0x140] ss:$16 sps:$4 sm:$0xff]   ;;  %p2117_p2 = scmp.ne.s32.totalorder %s1680_s14, %s2116_s15  ;;  %p2122_p4 = scmp.lt.s32.totalorder %s2116_s15, %s2116_s15 }
  0x38   :  { %841 = vmatpush1.bf16.msra.mxu0 %v1894_v20  ;;  %v1920_v35 = vld [vmem:[#allocation3 + $0x144] ss:$16 sps:$4 sm:$0xff]   ;;  %v2251_v42 = vld [vmem:[%s2413_s2] ss:$0 sm:$0xff]  ;;  %s2152_s2 = smov 64  }
  0x39   :  { %842 = vmatprep.subr.bf16.mxu0 %v1899_v21  ;;  %p2123_p5 = por %p2122_p4, %p2121_p3 }
  0x3b   :  { %p2124_p6 = pnand %p2123_p5, %p2117_p2 }
  0x3c   :  { %843 = vmatpush1.bf16.msra.mxu0 %v1897_v22 }
  0x3d   :  { %844 = vmatprep.subr.bf16.mxu0 %v1902_v23 }
  0x40   :  { %845 = vmatpush1.bf16.msra.mxu0 %v1900_v24 }
  0x41   :  { %846 = vmatprep.subr.bf16.mxu0 %v1905_v25 }
  0x44   :  { %847 = vmatpush1.bf16.msra.mxu0 %v1903_v26 }
  0x45   :  { %848 = vmatprep.subr.bf16.mxu0 %v1908_v27 }
  0x48   :  { %849 = vmatpush1.bf16.msra.mxu0 %v1906_v28 }
  0x49   :  { %850 = vmatprep.subr.bf16.mxu0 %v1911_v29 }
  0x4c   :  { %851 = vmatpush1.bf16.msra.mxu0 %v1909_v30 }
  0x4d   :  { %852 = vmatprep.subr.bf16.mxu0 %v1914_v31 }
  0x50   :  { %853 = vmatpush1.bf16.msra.mxu0 %v1912_v32 }
  0x51   :  { %854 = vmatprep.subr.bf16.mxu0 %v1917_v33 }
  0x54   :  { %855 = vmatpush1.bf16.msra.mxu0 %v1915_v34 }
  0x55   :  { %856 = vmatprep.subr.bf16.mxu0 %v1920_v35 }
  0x58   :  { %857 = vmatpush1.bf16.msra.mxu0 %v1918_v36 }
 0x102   :  { %v1862_v43 = vpop.f32.mrb[0].mxu0 }
 0x103   :  { %v164_v44 = vadd.f32 %v1862_v43, %v2251_v42  ;;  %v158_v46 = vpop.f32.mrb[1].mxu0 }
 0x104   :  { %v159_v47 = vadd.f32 %v2251_v42, %v158_v46 }
 0x105   :  { %v178_v48 = vmax.f32 %v164_v44, 0.0 }
 0x106   :  { %v177_v49 = vmax.f32 %v159_v47, 0.0  ;;  %v1865_v50 = vpop.f32.mrb[2].mxu0 }
 0x107   :  { %v202_v51 = vcombine.high %v178_v48, %v178_v48  ;;  %v209_v52 = vrot.slane %v178_v48, %v2255_v45  ;;  %v174_v53 = vadd.f32 %v1865_v50, %v2251_v42  ;;  %v2260_v54 = vpop.f32.mrb[3].mxu0 }
 0x108   :  { %v185_v55 = vcombine.high %v177_v49, %v177_v49  ;;  %v192_v56 = vrot.slane %v177_v49, %v2255_v45 }
 0x109   :  { %v216_v57 = vrot.slane %v202_v51, %v2255_v45  ;;  %v217_v58 = vcombine.high %v209_v52, %v209_v52  ;;  %v298_v59 = vsel %vm269_vm10, %v209_v52, -inf  ;;  %v2265_v60 = vmax.f32 %v174_v53, 0.0 }
 0x10a   :  { %v299_v61 = vrot.slane %v298_v59, 4  ;;  %v199_v62 = vrot.slane %v185_v55, %v2255_v45  ;;  %v200_v63 = vcombine.high %v192_v56, %v192_v56  ;;  %v270_v0 = vsel %vm269_vm10, %v192_v56, -inf }
 0x10b   :  { %v218_v1 = vcombine.high %v216_v57, %v216_v57  ;;  %v305_v2 = vsel %vm269_vm10, %v217_v58, -inf  ;;  %v312_v3 = vsel %vm269_vm10, %v216_v57, -inf  ;;  %v271_v4 = vrot.slane %v270_v0, 4 }
 0x10c   :  { %v300_v5 = vmax.f32 %v298_v59, %v299_v61  ;;  %v306_v6 = vrot.slane %v305_v2, 4  ;;  %v313_v7 = vrot.slane %v312_v3, 4  ;;  %v201_v8 = vcombine.high %v199_v62, %v199_v62 }
 0x10d   :  { %v319_v9 = vsel %vm269_vm10, %v218_v1, -inf  ;;  %v272_v10 = vmax.f32 %v270_v0, %v271_v4  ;;  %v277_v11 = vsel %vm269_vm10, %v200_v63, -inf  ;;  %v284_v12 = vsel %vm269_vm10, %v199_v62, -inf }
 0x10e   :  { %v301_v13 = vrot.slane %v300_v5, 2  ;;  %v307_v14 = vmax.f32 %v305_v2, %v306_v6  ;;  %v314_v15 = vmax.f32 %v312_v3, %v313_v7  ;;  %v320_v16 = vrot.slane %v319_v9, 4 }
 0x10f   :  { %v273_v17 = vrot.slane %v272_v10, 2  ;;  %v278_v18 = vrot.slane %v277_v11, 4  ;;  %v285_v19 = vrot.slane %v284_v12, 4  ;;  %v291_v20 = vsel %vm269_vm10, %v201_v8, -inf }
 0x110   :  { %v302_v21 = vmax.f32 %v300_v5, %v301_v13  ;;  %v308_v22 = vrot.slane %v307_v14, 2  ;;  %v315_v23 = vrot.slane %v314_v15, 2  ;;  %v321_v24 = vmax.f32 %v319_v9, %v320_v16 }
 0x111   :  { %v274_v25 = vmax.f32 %v272_v10, %v273_v17  ;;  %v279_v26 = vmax.f32 %v277_v11, %v278_v18  ;;  %v286_v27 = vmax.f32 %v284_v12, %v285_v19  ;;  %v292_v28 = vrot.slane %v291_v20, 4 }
 0x112   :  { %v303_v29 = vrot.slane %v302_v21, 1  ;;  %v309_v30 = vmax.f32 %v307_v14, %v308_v22  ;;  %v316_v31 = vmax.f32 %v314_v15, %v315_v23  ;;  %v322_v32 = vrot.slane %v321_v24, 2 }
 0x113   :  { %v275_v33 = vrot.slane %v274_v25, 1  ;;  %v280_v34 = vrot.slane %v279_v26, 2  ;;  %v287_v35 = vrot.slane %v286_v27, 2  ;;  %v293_v36 = vmax.f32 %v291_v20, %v292_v28 }
 0x114   :  { %v304_v37 = vmax.f32 %v302_v21, %v303_v29  ;;  %v310_v38 = vrot.slane %v309_v30, 1  ;;  %v317_v39 = vrot.slane %v316_v31, 1  ;;  %v323_v40 = vmax.f32 %v321_v24, %v322_v32 }
 0x115   :  { %v276_v43 = vmax.f32 %v274_v25, %v275_v33  ;;  %v281_v44 = vmax.f32 %v279_v26, %v280_v34  ;;  %v288_v46 = vmax.f32 %v286_v27, %v287_v35  ;;  %v294_v47 = vrot.slane %v293_v36, 2 }
 0x116   :  { %v311_v48 = vmax.f32 %v309_v30, %v310_v38  ;;  %v318_v49 = vmax.f32 %v316_v31, %v317_v39  ;;  %v324_v50 = vrot.slane %v323_v40, 1  ;;  %v404_v51 = vpack.c.bf16 %v304_v37, %v304_v37  ;;  %v473_v37 = vld [vmem:[#allocation2] sm:$0x1f] }
 0x117   :  { %v282_v52 = vrot.slane %v281_v44, 1  ;;  %v289_v53 = vrot.slane %v288_v46, 1  ;;  %v295_v55 = vmax.f32 %v293_v36, %v294_v47  ;;  %v400_v57 = vpack.c.bf16 %v276_v43, %v276_v43  ;;  %v1960_v36 = vld [vmem:[#allocation6 + $0x4] ss:$8 sps:$4 sm:$0xff]  }
 0x118   :  { %v325_v56 = vmax.f32 %v323_v40, %v324_v50  ;;  %v169_v58 = vadd.f32 %v2251_v42, %v2260_v54  ;;  %v405_v63 = vpack.c.bf16 %v311_v48, %v311_v48  ;;  %v406_v0 = vpack.c.bf16 %v318_v49, %v318_v49  ;;  %1411 = vmatprep.subr.bf16.mxu1 %v1960_v36  ;;  %v2056_v36 = vld [vmem:[%s2418_s7 + $0x40] sm:$0xff]  }
 0x119   :  { %v283_v59 = vmax.f32 %v281_v44, %v282_v52  ;;  %v290_v61 = vmax.f32 %v288_v46, %v289_v53  ;;  %v296_v62 = vrot.slane %v295_v55, 1  ;;  %v436_v1 = vunpack.c.l.b16 %v404_v51 }
 0x11a   :  { %v236_v2 = vcombine.high %v2265_v60, %v2265_v60  ;;  %v243_v6 = vrot.slane %v2265_v60, %v2255_v45  ;;  %v407_v7 = vpack.c.bf16 %v325_v56, %v325_v56  ;;  %v432_v42 = vunpack.c.l.b16 %v400_v57 }
 0x11b   :  { %v297_v3 = vmax.f32 %v295_v55, %v296_v62  ;;  %v401_v4 = vpack.c.bf16 %v283_v59, %v283_v59  ;;  %v402_v5 = vpack.c.bf16 %v290_v61, %v290_v61  ;;  %v179_v8 = vmax.f32 %v169_v58, 0.0  ;;  %v1921_v59 = vld [vmem:[#allocation3 + $0x160] ss:$16 sps:$4 sm:$0xff]   ;;  %v1923_v61 = vld [vmem:[#allocation3 + $0x164] ss:$16 sps:$4 sm:$0xff]  }
 0x11c   :  { %v250_v54 = vrot.slane %v236_v2, %v2255_v45  ;;  %v251_v12 = vcombine.high %v243_v6, %v243_v6  ;;  %v354_v14 = vsel %vm269_vm10, %v243_v6, -inf  ;;  %v437_v24 = vunpack.c.l.b16 %v405_v63  ;;  %858 = vmatprep.subr.bf16.mxu0 %v1923_v61 }
 0x11d   :  { %v403_v9 = vpack.c.bf16 %v297_v3, %v297_v3  ;;  %v433_v10 = vunpack.c.l.b16 %v401_v4  ;;  %v434_v11 = vunpack.c.l.b16 %v402_v5  ;;  %v219_v16 = vcombine.high %v179_v8, %v179_v8  ;;  %859 = vmatpush1.bf16.msra.mxu0 %v1921_v59 }
 0x11e   :  { %v252_v13 = vcombine.high %v250_v54, %v250_v54  ;;  %v368_v15 = vsel %vm269_vm10, %v250_v54, -inf  ;;  %v355_v19 = vrot.slane %v354_v14, 4  ;;  %v361_v60 = vsel %vm269_vm10, %v251_v12, -inf }
 0x11f   :  { %v435_v17 = vunpack.c.l.b16 %v403_v9  ;;  %v449_v18 = vsel %vm448_vm11, %v433_v10, %v432_v42  ;;  %v362_v21 = vrot.slane %v361_v60, 4  ;;  %v369_v22 = vrot.slane %v368_v15, 4 }
 0x120   :  { %v451_v20 = vsel %vm450_vm12, %v434_v11, %v449_v18  ;;  %v375_v23 = vsel %vm269_vm10, %v252_v13, -inf  ;;  %v226_v27 = vrot.slane %v179_v8, %v2255_v45  ;;  %v438_v28 = vunpack.c.l.b16 %v406_v0 }
 0x121   :  { %v453_v25 = vsel %vm452_vm13, %v435_v17, %v451_v20  ;;  %v376_v26 = vrot.slane %v375_v23, 4  ;;  %v233_v30 = vrot.slane %v219_v16, %v2255_v45  ;;  %v439_v31 = vunpack.c.l.b16 %v407_v7 }
 0x122   :  { %v455_v29 = vsel %vm454_vm14, %v436_v1, %v453_v25  ;;  %v356_v33 = vmax.f32 %v354_v14, %v355_v19  ;;  %v234_v34 = vcombine.high %v226_v27, %v226_v27  ;;  %v363_v38 = vmax.f32 %v361_v60, %v362_v21 }
 0x123   :  { %v457_v32 = vsel %vm456_vm15, %v437_v24, %v455_v29  ;;  %v370_v39 = vmax.f32 %v368_v15, %v369_v22  ;;  %v377_v43 = vmax.f32 %v375_v23, %v376_v26  ;;  %v326_v45 = vsel %vm269_vm10, %v226_v27, -inf }
 0x124   :  { %v459_v35 = vsel %vm458_vm0, %v438_v28, %v457_v32  ;;  %v235_v44 = vcombine.high %v233_v30, %v233_v30  ;;  %v327_v46 = vrot.slane %v326_v45, 4  ;;  %v333_v47 = vsel %vm269_vm10, %v234_v34, -inf }
 0x125   :  { %v466_v40 = vpack.c.b16 %v439_v31, %v459_v35  ;;  %v357_v49 = vrot.slane %v356_v33, 2  ;;  %v334_v50 = vrot.slane %v333_v47, 4  ;;  %v364_v51 = vrot.slane %v363_v38, 2 }
 0x126   :  { %v371_v52 = vrot.slane %v370_v39, 2  ;;  %v328_v53 = vmax.f32 %v326_v45, %v327_v46  ;;  %v340_v55 = vsel %vm269_vm10, %v233_v30, -inf  ;;  %v378_v56 = vrot.slane %v377_v43, 2 }
 0x127   :  { %v474_v48 = vsel %vm2296_vm3, %v466_v40, %v473_v37  ;;  %v335_v57 = vmax.f32 %v333_v47, %v334_v50  ;;  %v341_v58 = vrot.slane %v340_v55, 4  ;;  %v347_v63 = vsel %vm269_vm10, %v235_v44, -inf }
 0x128   :  { %475 = vst [vmem:[#allocation2] sm:$0x1f] %v474_v48  ;;  %v329_v62 = vrot.slane %v328_v53, 2  ;;  %v358_v0 = vmax.f32 %v356_v33, %v357_v49  ;;  %v365_v3 = vmax.f32 %v363_v38, %v364_v51  ;;  %v348_v5 = vrot.slane %v347_v63, 4 }
 0x129   :  { %v336_v1 = vrot.slane %v335_v57, 2  ;;  %v342_v2 = vmax.f32 %v340_v55, %v341_v58  ;;  %v372_v6 = vmax.f32 %v370_v39, %v371_v52  ;;  %v379_v7 = vmax.f32 %v377_v43, %v378_v56  ;;  %v476_v58 = vld [vmem:[#allocation2 + $0x8] sm:$0x1f] }
 0x12a   :  { %v330_v4 = vmax.f32 %v328_v53, %v329_v62  ;;  %v349_v9 = vmax.f32 %v347_v63, %v348_v5  ;;  %v359_v10 = vrot.slane %v358_v0, 1  ;;  %v366_v14 = vrot.slane %v365_v3, 1  ;;  %v1926_v62 = vld [vmem:[#allocation3 + $0xc] ss:$16 sps:$4 sm:$0xff]  }
 0x12b   :  { %v337_v42 = vmax.f32 %v335_v57, %v336_v1  ;;  %v343_v54 = vrot.slane %v342_v2, 2  ;;  %v373_v18 = vrot.slane %v372_v6, 1  ;;  %v380_v19 = vrot.slane %v379_v7, 1  ;;  %879 = vmatprep.subr.bf16.mxu0 %v1926_v62  ;;  %v1993_v62 = vld [vmem:[#allocation6 + $0xb4] ss:$8 sps:$4 sm:$0xff]  }
 0x12c   :  { %v331_v8 = vrot.slane %v330_v4, 1  ;;  %v350_v16 = vrot.slane %v349_v9, 2  ;;  %v360_v25 = vmax.f32 %v358_v0, %v359_v10  ;;  %v367_v28 = vmax.f32 %v365_v3, %v366_v14  ;;  %v1966_v10 = vld [vmem:[#allocation6 + $0x24] ss:$8 sps:$4 sm:$0xff]  }
 0x12d   :  { %v338_v11 = vrot.slane %v337_v42, 1  ;;  %v344_v12 = vmax.f32 %v342_v2, %v343_v54  ;;  %v374_v31 = vmax.f32 %v372_v6, %v373_v18  ;;  %v381_v35 = vmax.f32 %v379_v7, %v380_v19  ;;  %v1962_v54 = vld [vmem:[#allocation6] ss:$8 sps:$4 sm:$0xff]   ;;  %v1972_v14 = vld [vmem:[#allocation6 + $0x44] ss:$8 sps:$4 sm:$0xff]  }
 0x12e   :  { %v332_v15 = vmax.f32 %v330_v4, %v331_v8  ;;  %v351_v21 = vmax.f32 %v349_v9, %v350_v16  ;;  %v412_v38 = vpack.c.bf16 %v360_v25, %v360_v25  ;;  %v413_v43 = vpack.c.bf16 %v367_v28, %v367_v28  ;;  %v1963_v8 = vld [vmem:[#allocation6 + $0x14] ss:$8 sps:$4 sm:$0xff]   ;;  %1412 = vmatpush1.bf16.msra.mxu1 %v1962_v54  ;;  %v1965_v9 = vld [vmem:[#allocation6 + $0x10] ss:$8 sps:$4 sm:$0xff]   ;;  %v1978_v18 = vld [vmem:[#allocation6 + $0x64] ss:$8 sps:$4 sm:$0xff]  }
 0x12f   :  { %v530_v13 = vld [vmem:[#allocation2] sm:$0x1f]  ;;  %v339_v60 = vmax.f32 %v337_v42, %v338_v11  ;;  %v345_v20 = vrot.slane %v344_v12, 1  ;;  %v414_v44 = vpack.c.bf16 %v374_v31, %v374_v31  ;;  %v415_v47 = vpack.c.bf16 %v381_v35, %v381_v35  ;;  %1413 = vmatprep.subr.bf16.mxu1 %v1963_v8  ;;  %v1968_v11 = vld [vmem:[#allocation6 + $0x20] ss:$8 sps:$4 sm:$0xff]   ;;  %v2058_v8 = vld [vmem:[%s2418_s7 + $0x48] sm:$0xff]  }
 0x130   :  { %v537_v17 = vshll.u32 %v530_v13, 16  ;;  %v408_v22 = vpack.c.bf16 %v332_v15, %v332_v15  ;;  %v535_v23 = vshrl.u32 %v530_v13, 16  ;;  %v352_v29 = vrot.slane %v351_v21, 1  ;;  %v532_v63 = vld [vmem:[#allocation2] sm:$0x1e] }
 0x131   :  { %v346_v26 = vmax.f32 %v344_v12, %v345_v20  ;;  %v409_v27 = vpack.c.bf16 %v339_v60, %v339_v60  ;;  %v444_v49 = vunpack.c.l.b16 %v412_v38  ;;  %v445_v50 = vunpack.c.l.b16 %v413_v43  ;;  %v1969_v12 = vld [vmem:[#allocation6 + $0x34] ss:$8 sps:$4 sm:$0xff]   ;;  %v1971_v13 = vld [vmem:[#allocation6 + $0x30] ss:$8 sps:$4 sm:$0xff]   ;;  %v1974_v15 = vld [vmem:[#allocation6 + $0x40] ss:$8 sps:$4 sm:$0xff]  }
 0x132   :  { %v539_v24 = vrot.slane %v537_v17, 1  ;;  %v440_v33 = vunpack.c.l.b16 %v408_v22  ;;  %v353_v37 = vmax.f32 %v351_v21, %v352_v29  ;;  %v446_v52 = vunpack.c.l.b16 %v414_v44  ;;  %1414 = vmatpush1.bf16.msra.mxu1 %v1965_v9  ;;  %v1975_v16 = vld [vmem:[#allocation6 + $0x54] ss:$8 sps:$4 sm:$0xff]   ;;  %v1977_v17 = vld [vmem:[#allocation6 + $0x50] ss:$8 sps:$4 sm:$0xff]  }
 0x133   :  { %v410_v32 = vpack.c.bf16 %v346_v26, %v346_v26  ;;  %v441_v34 = vunpack.c.l.b16 %v409_v27  ;;  %v447_v55 = vunpack.c.l.b16 %v415_v47  ;;  %v554_v2 = vrot.slane %v532_v63, 1  ;;  %1415 = vmatprep.subr.bf16.mxu1 %v1966_v10  ;;  %v1980_v19 = vld [vmem:[#allocation6 + $0x60] ss:$8 sps:$4 sm:$0xff]   ;;  %v1981_v60 = vld [vmem:[#allocation6 + $0x74] ss:$8 sps:$4 sm:$0xff]  }
 0x134   :  { %v540_v30 = vor.u32 %v539_v24, %v535_v23  ;;  %v411_v45 = vpack.c.bf16 %v353_v37, %v353_v37  ;;  %v1983_v20 = vld [vmem:[#allocation6 + $0x70] ss:$8 sps:$4 sm:$0xff]   ;;  %v1984_v21 = vld [vmem:[#allocation6 + $0x84] ss:$8 sps:$4 sm:$0xff]   ;;  %v1986_v22 = vld [vmem:[#allocation6 + $0x80] ss:$8 sps:$4 sm:$0xff]  }
 0x135   :  { %v442_v39 = vunpack.c.l.b16 %v410_v32  ;;  %v460_v40 = vsel %vm448_vm11, %v441_v34, %v440_v33  ;;  %v1987_v23 = vld [vmem:[#allocation6 + $0x94] ss:$8 sps:$4 sm:$0xff]   ;;  %v528_v25 = vld [vmem:[#allocation2] sm:$0xf]  ;;  %v1927_v33 = vld [vmem:[#allocation3 + $0x28] ss:$16 sps:$4 sm:$0xff]  }
 0x136   :  { %548 = vrot.lane.b32.xlu0 %v540_v30, %s2152_s2  ;;  %v443_v48 = vunpack.c.l.b16 %v411_v45  ;;  %1416 = vmatpush1.bf16.msra.mxu1 %v1968_v11  ;;  %v1924_v30 = vld [vmem:[#allocation3 + $0x8] ss:$16 sps:$4 sm:$0xff]   ;;  %v1929_v32 = vld [vmem:[#allocation3 + $0x2c] ss:$16 sps:$4 sm:$0xff]   ;;  %v2057_v54 = vld [vmem:[%s2418_s7] sm:$0xff]  }
 0x137   :  { %v461_v46 = vsel %vm450_vm12, %v442_v39, %v460_v40  ;;  %1417 = vmatprep.subr.bf16.mxu1 %v1969_v12  ;;  %v1932_v34 = vld [vmem:[#allocation3 + $0x4c] ss:$16 sps:$4 sm:$0xff]   ;;  %v1930_v35 = vld [vmem:[#allocation3 + $0x48] ss:$16 sps:$4 sm:$0xff]   ;;  %v2060_v10 = vld [vmem:[%s2418_s7 + $0x50] sm:$0xff]  }
 0x138   :  { %v462_v51 = vsel %vm452_vm13, %v443_v48, %v461_v46  ;;  %v1935_v37 = vld [vmem:[#allocation3 + $0x6c] ss:$16 sps:$4 sm:$0xff]   ;;  %v1933_v38 = vld [vmem:[#allocation3 + $0x68] ss:$16 sps:$4 sm:$0xff]   ;;  %v2061_v11 = vld [vmem:[%s2418_s7 + $0x10] sm:$0xff]  }
 0x139   :  { %v463_v53 = vsel %vm454_vm14, %v444_v49, %v462_v51  ;;  %v1938_v39 = vld [vmem:[#allocation3 + $0x8c] ss:$16 sps:$4 sm:$0xff]   ;;  %v1936_v40 = vld [vmem:[#allocation3 + $0x88] ss:$16 sps:$4 sm:$0xff]  }
 0x13a   :  { %v464_v56 = vsel %vm456_vm15, %v445_v50, %v463_v53  ;;  %1418 = vmatpush1.bf16.msra.mxu1 %v1971_v13  ;;  %v1941_v43 = vld [vmem:[#allocation3 + $0xac] ss:$16 sps:$4 sm:$0xff]   ;;  %v1939_v45 = vld [vmem:[#allocation3 + $0xa8] ss:$16 sps:$4 sm:$0xff]  }
 0x13b   :  { %v465_v57 = vsel %vm458_vm0, %v446_v52, %v464_v56  ;;  %1419 = vmatprep.subr.bf16.mxu1 %v1972_v14  ;;  %v1944_v44 = vld [vmem:[#allocation3 + $0xcc] ss:$16 sps:$4 sm:$0xff]   ;;  %v1942_v46 = vld [vmem:[#allocation3 + $0xc8] ss:$16 sps:$4 sm:$0xff]   ;;  %v2064_v14 = vld [vmem:[%s2418_s7 + $0x60] sm:$0xff]  }
 0x13c   :  { %v467_v59 = vpack.c.b16 %v447_v55, %v465_v57  ;;  %v1947_v47 = vld [vmem:[#allocation3 + $0xec] ss:$16 sps:$4 sm:$0xff]   ;;  %v1945_v48 = vld [vmem:[#allocation3 + $0xe8] ss:$16 sps:$4 sm:$0xff]  }
 0x13d   :  { %v1950_v49 = vld [vmem:[#allocation3 + $0x10c] ss:$16 sps:$4 sm:$0xff]   ;;  %v1948_v50 = vld [vmem:[#allocation3 + $0x108] ss:$16 sps:$4 sm:$0xff]  }
 0x13e   :  { %v477_v61 = vsel %vm2296_vm3, %v467_v59, %v476_v58  ;;  %1420 = vmatpush1.bf16.msra.mxu1 %v1974_v15  ;;  %v1953_v51 = vld [vmem:[#allocation3 + $0x12c] ss:$16 sps:$4 sm:$0xff]   ;;  %v1951_v52 = vld [vmem:[#allocation3 + $0x128] ss:$16 sps:$4 sm:$0xff]   ;;  %v2065_v15 = vld [vmem:[%s2418_s7 + $0x20] sm:$0xff]  }
 0x13f   :  { %478 = vst [vmem:[#allocation2 + $0x8] sm:$0x1f] %v477_v61  ;;  %1421 = vmatprep.subr.bf16.mxu1 %v1975_v16  ;;  %v1956_v53 = vld [vmem:[#allocation3 + $0x14c] ss:$16 sps:$4 sm:$0xff]   ;;  %v1954_v55 = vld [vmem:[#allocation3 + $0x148] ss:$16 sps:$4 sm:$0xff]  }
 0x140   :  { %v1959_v56 = vld [vmem:[#allocation3 + $0x16c] ss:$16 sps:$4 sm:$0xff]   ;;  %v1957_v57 = vld [vmem:[#allocation3 + $0x168] ss:$16 sps:$4 sm:$0xff]  }
 0x141   :  { %v1989_v58 = vld [vmem:[#allocation6 + $0x90] ss:$8 sps:$4 sm:$0xff]   ;;  %v1990_v59 = vld [vmem:[#allocation6 + $0xa4] ss:$8 sps:$4 sm:$0xff]   ;;  %v1992_v61 = vld [vmem:[#allocation6 + $0xa0] ss:$8 sps:$4 sm:$0xff]  }
 0x142   :  { %1422 = vmatpush1.bf16.msra.mxu1 %v1977_v17  ;;  %v1995_v63 = vld [vmem:[#allocation6 + $0xb0] ss:$8 sps:$4 sm:$0xff]   ;;  %v2062_v12 = vld [vmem:[%s2418_s7 + $0x58] sm:$0xff]  }
 0x143   :  { %1423 = vmatprep.subr.bf16.mxu1 %v1978_v18  ;;  %v2059_v9 = vld [vmem:[%s2418_s7 + $0x8] sm:$0xff]   ;;  %v2063_v13 = vld [vmem:[%s2418_s7 + $0x18] sm:$0xff]   ;;  %v572_v18 = vsub.s32 0, %v2246_v41 }
 0x144   :  { %v2066_v16 = vld [vmem:[%s2418_s7 + $0x68] sm:$0xff]  }
 0x145   :  { %v2067_v17 = vld [vmem:[%s2418_s7 + $0x28] sm:$0xff]  }
 0x146   :  { %v533_v0 = vld [vmem:[#allocation2 + $0x8] sm:$0x1e]  ;;  %1424 = vmatpush1.bf16.msra.mxu1 %v1980_v19  ;;  %v2360_v19 = vld [vmem:[%s2415_s4] sm:$0xf] }
 0x147   :  { %v531_v1 = vld [vmem:[#allocation2 + $0x8] sm:$0x1f]  ;;  %v555_v3 = vrot.slane %v533_v0, 1  ;;  %1425 = vmatprep.subr.bf16.mxu1 %v1981_v60  ;;  %v1996_v0 = vld [vmem:[#allocation6 + $0xc4] ss:$8 sps:$4 sm:$0xff]   ;;  %v576_v60 = vsub.s32 1, %v2246_v41 }
 0x148   :  { %v544_v4 = vshll.u32 %v531_v1, 16  ;;  %v542_v6 = vshrl.u32 %v531_v1, 16  ;;  %v529_v26 = vld [vmem:[#allocation2 + $0x8] sm:$0xf]  ;;  %v1998_v1 = vld [vmem:[#allocation6 + $0xc0] ss:$8 sps:$4 sm:$0xff]  }
 0x149   :  { %v1696_v5 = vcombine.low %v554_v2, %v555_v3  ;;  %v1999_v2 = vld [vmem:[#allocation6 + $0xd4] ss:$8 sps:$4 sm:$0xff]   ;;  %v2001_v3 = vld [vmem:[#allocation6 + $0xd0] ss:$8 sps:$4 sm:$0xff]  }
 0x14a   :  { %v546_v7 = vrot.slane %v544_v4, 1  ;;  %1426 = vmatpush1.bf16.msra.mxu1 %v1983_v20  ;;  %v2002_v4 = vld [vmem:[#allocation6 + $0xe4] ss:$8 sps:$4 sm:$0xff]   ;;  %v573_v20 = vrot.slane %v2360_v19, %v572_v18 }
 0x14b   :  { %1745 = vmatprep.mubr.msk.bf16.mxu0 %vm556_vm4, %v1696_v5  ;;  %1427 = vmatprep.subr.bf16.mxu1 %v1984_v21  ;;  %v577_v21 = vrot.slane %v2360_v19, %v576_v60 }
 0x14c   :  { %v547_v42 = vor.u32 %v546_v7, %v542_v6  ;;  %v2005_v6 = vld [vmem:[#allocation6 + $0xf4] ss:$8 sps:$4 sm:$0xff]   ;;  %v2007_v7 = vld [vmem:[#allocation6 + $0xf0] ss:$8 sps:$4 sm:$0xff]  }
 0x14e   :  { %550 = vrot.lane.b32.xlu0 %v547_v42, %s2152_s2  ;;  %1428 = vmatpush1.bf16.msra.mxu1 %v1986_v22  ;;  %v2010_v42 = vld [vmem:[#allocation6 + $0x104] ss:$8 sps:$4 sm:$0xff]  }
 0x14f   :  { %1429 = vmatprep.subr.bf16.mxu1 %v1987_v23 }
 0x152   :  { %1430 = vmatpush1.bf16.msra.mxu1 %v1989_v58 }
 0x153   :  { %1431 = vmatprep.subr.bf16.mxu1 %v1990_v59 }
 0x156   :  { %1432 = vmatpush1.bf16.msra.mxu1 %v1992_v61 }
 0x157   :  { %1433 = vmatprep.subr.bf16.mxu1 %v1993_v62 }
 0x15a   :  { %1434 = vmatpush1.bf16.msra.mxu1 %v1995_v63 }
 0x15b   :  { %1435 = vmatprep.subr.bf16.mxu1 %v1996_v0 }
 0x15e   :  { %1436 = vmatpush1.bf16.msra.mxu1 %v1998_v1 }
 0x15f   :  { %1437 = vmatprep.subr.bf16.mxu1 %v1999_v2 }
 0x162   :  { %1438 = vmatpush1.bf16.msra.mxu1 %v2001_v3 }
 0x163   :  { %1439 = vmatprep.subr.bf16.mxu1 %v2002_v4 }
 0x1a8   :  { %v549_v24 = vpop.permute.xlu0 %548 }
 0x1a9   :  { %v559_v28 = vsel %vm556_vm4, %v528_v25, %v549_v24 }
 0x1c0   :  { %v551_v27 = vpop.permute.xlu0 %550 }
 0x1c1   :  { %v562_v29 = vsel %vm556_vm4, %v529_v26, %v551_v27 }
 0x1c2   :  { %v1695_v31 = vcombine.low %v559_v28, %v562_v29 }
 0x1c4   :  { %869 = vmatmul.mubr.bf16.vlgmr.msra.gmra.mrb[4].mxu0 %v1695_v31 }
 0x1c5   :  { %880 = vmatpush1.bf16.msra.mxu0 %v1924_v30  ;;  %1746 = vmatprep.mubr.msk.bf16.mxu0 %vm556_vm4, %v1696_v5  ;;  %v2004_v5 = vld [vmem:[#allocation6 + $0xe0] ss:$8 sps:$4 sm:$0xff]  }
 0x1c6   :  { %881 = vmatprep.subr.bf16.mxu0 %v1929_v32  ;;  %1440 = vmatpush1.bf16.msra.mxu1 %v2004_v5 }
 0x1c7   :  { %1441 = vmatprep.subr.bf16.mxu1 %v2005_v6 }
 0x1c9   :  { %882 = vmatpush1.bf16.msra.mxu0 %v1927_v33 }
 0x1ca   :  { %883 = vmatprep.subr.bf16.mxu0 %v1932_v34  ;;  %1442 = vmatpush1.bf16.msra.mxu1 %v2007_v7 }
 0x1cb   :  { %1452 = vmatprep.subr.bf16.mxu1 %v2010_v42 }
 0x1cd   :  { %884 = vmatpush1.bf16.msra.mxu0 %v1930_v35 }
 0x1ce   :  { %885 = vmatprep.subr.bf16.mxu0 %v1935_v37 }
 0x1d1   :  { %886 = vmatpush1.bf16.msra.mxu0 %v1933_v38 }
 0x1d2   :  { %887 = vmatprep.subr.bf16.mxu0 %v1938_v39 }
 0x1d5   :  { %888 = vmatpush1.bf16.msra.mxu0 %v1936_v40 }
 0x1d6   :  { %889 = vmatprep.subr.bf16.mxu0 %v1941_v43 }
 0x1d9   :  { %890 = vmatpush1.bf16.msra.mxu0 %v1939_v45 }
 0x1da   :  { %891 = vmatprep.subr.bf16.mxu0 %v1944_v44 }
 0x1dd   :  { %892 = vmatpush1.bf16.msra.mxu0 %v1942_v46 }
 0x1de   :  { %893 = vmatprep.subr.bf16.mxu0 %v1947_v47 }
 0x1e1   :  { %894 = vmatpush1.bf16.msra.mxu0 %v1945_v48 }
 0x1e2   :  { %895 = vmatprep.subr.bf16.mxu0 %v1950_v49 }
 0x1e5   :  { %896 = vmatpush1.bf16.msra.mxu0 %v1948_v50 }
 0x1e6   :  { %897 = vmatprep.subr.bf16.mxu0 %v1953_v51 }
 0x1e9   :  { %898 = vmatpush1.bf16.msra.mxu0 %v1951_v52 }
 0x1ea   :  { %899 = vmatprep.subr.bf16.mxu0 %v1956_v53 }
 0x1ed   :  { %900 = vmatpush1.bf16.msra.mxu0 %v1954_v55 }
 0x1ee   :  { %901 = vmatprep.subr.bf16.mxu0 %v1959_v56 }
 0x1f1   :  { %902 = vmatpush1.bf16.msra.mxu0 %v1957_v57 }
 0x1f2   :  { %1834 = vmatprep.subr.bf16.mxu0 %v2056_v36 }
 0x1f4   :  { %912 = vmatmul.mubr.bf16.vlgmr.msra.gmra.mrb[8].mxu0 %v1695_v31 }
 0x1f5   :  { %1835 = vmatpush3.bf16.msra.mxu0 %v2057_v54  ;;  %v2008_v54 = vld [vmem:[#allocation6 + $0x100] ss:$8 sps:$4 sm:$0xff]  }
 0x1f6   :  { %1836 = vmatprep.subr.bf16.mxu0 %v2058_v8 }
 0x1f9   :  { %1837 = vmatpush3.bf16.msra.mxu0 %v2059_v9  ;;  %v2013_v9 = vld [vmem:[#allocation6 + $0x114] ss:$8 sps:$4 sm:$0xff]  }
 0x1fa   :  { %1838 = vmatprep.subr.bf16.mxu0 %v2060_v10  ;;  %v2011_v10 = vld [vmem:[#allocation6 + $0x110] ss:$8 sps:$4 sm:$0xff]  }
 0x1fd   :  { %1839 = vmatpush3.bf16.msra.mxu0 %v2061_v11  ;;  %v2016_v11 = vld [vmem:[#allocation6 + $0x124] ss:$8 sps:$4 sm:$0xff]  }
 0x1fe   :  { %1840 = vmatprep.subr.bf16.mxu0 %v2062_v12  ;;  %v2014_v12 = vld [vmem:[#allocation6 + $0x120] ss:$8 sps:$4 sm:$0xff]  }
 0x201   :  { %1841 = vmatpush3.bf16.msra.mxu0 %v2063_v13  ;;  %v2019_v13 = vld [vmem:[#allocation6 + $0x134] ss:$8 sps:$4 sm:$0xff]  }
 0x202   :  { %1842 = vmatprep.subr.bf16.mxu0 %v2064_v14  ;;  %v2017_v14 = vld [vmem:[#allocation6 + $0x130] ss:$8 sps:$4 sm:$0xff]  }
 0x205   :  { %1843 = vmatpush3.bf16.msra.mxu0 %v2065_v15  ;;  %v2022_v15 = vld [vmem:[#allocation6 + $0x144] ss:$8 sps:$4 sm:$0xff]  }
 0x206   :  { %1844 = vmatprep.subr.bf16.mxu0 %v2066_v16  ;;  %v2020_v16 = vld [vmem:[#allocation6 + $0x140] ss:$8 sps:$4 sm:$0xff]  }
 0x209   :  { %1845 = vmatpush3.bf16.msra.mxu0 %v2067_v17  ;;  %v580_v17 = vsub.s32 2, %v2246_v41 }
 0x297   :  { %v870_v22 = vpop.f32.mrb[4].mxu0 }
 0x298   :  { %v871_v23 = vadd.f32 %v870_v22, %v573_v20  ;;  %v872_v24 = vpop.f32.mrb[5].mxu0  ;;  %v581_v22 = vrot.slane %v2360_v19, %v580_v17 }
 0x299   :  { %v873_v25 = vadd.f32 %v872_v24, %v577_v21  ;;  %v874_v26 = vpop.f32.mrb[6].mxu0 }
 0x29a   :  { %v922_v27 = vmax.f32 %v871_v23, 0.0  ;;  %v875_v28 = vadd.f32 %v874_v26, %v573_v20  ;;  %v876_v29 = vpop.f32.mrb[7].mxu0  ;;  %v2025_v20 = vld [vmem:[#allocation6 + $0x154] ss:$8 sps:$4 sm:$0xff]   ;;  %v2023_v23 = vld [vmem:[#allocation6 + $0x150] ss:$8 sps:$4 sm:$0xff]  }
 0x29b   :  { %v923_v30 = vmax.f32 %v873_v25, 0.0  ;;  %v877_v31 = vadd.f32 %v876_v29, %v577_v21  ;;  %v584_v21 = vsub.s32 3, %v2246_v41  ;;  %v2028_v25 = vld [vmem:[#allocation6 + $0x164] ss:$8 sps:$4 sm:$0xff]   ;;  %v2026_v29 = vld [vmem:[#allocation6 + $0x160] ss:$8 sps:$4 sm:$0xff]  }
 0x29c   :  { %v930_v32 = vrot.slane %v922_v27, 4  ;;  %v926_v33 = vmax.f32 %v875_v28, 0.0 }
 0x29d   :  { %v936_v34 = vrot.slane %v923_v30, 4  ;;  %v927_v35 = vmax.f32 %v877_v31, 0.0  ;;  %v585_v24 = vrot.slane %v2360_v19, %v584_v21 }
 0x29e   :  { %v931_v37 = vmax.f32 %v922_v27, %v930_v32  ;;  %v954_v38 = vrot.slane %v926_v33, 4  ;;  %v2031_v32 = vld [vmem:[#allocation6 + $0x174] ss:$8 sps:$4 sm:$0xff]  }
 0x29f   :  { %v937_v39 = vmax.f32 %v923_v30, %v936_v34  ;;  %v960_v40 = vrot.slane %v927_v35, 4 }
 0x2a0   :  { %v932_v43 = vrot.slane %v931_v37, 2  ;;  %v955_v45 = vmax.f32 %v926_v33, %v954_v38 }
 0x2a1   :  { %v938_v44 = vrot.slane %v937_v39, 2  ;;  %v961_v46 = vmax.f32 %v927_v35, %v960_v40 }
 0x2a2   :  { %v933_v47 = vmax.f32 %v931_v37, %v932_v43  ;;  %v956_v48 = vrot.slane %v955_v45, 2  ;;  %v2029_v43 = vld [vmem:[#allocation6 + $0x170] ss:$8 sps:$4 sm:$0xff]  }
 0x2a3   :  { %v939_v49 = vmax.f32 %v937_v39, %v938_v44  ;;  %v962_v50 = vrot.slane %v961_v46, 2  ;;  %v2034_v44 = vld [vmem:[#allocation6 + $0x184] ss:$8 sps:$4 sm:$0xff]  }
 0x2a4   :  { %v934_v51 = vrot.slane %v933_v47, 1  ;;  %v957_v52 = vmax.f32 %v955_v45, %v956_v48 }
 0x2a5   :  { %v940_v53 = vrot.slane %v939_v49, 1  ;;  %v963_v55 = vmax.f32 %v961_v46, %v962_v50 }
 0x2a6   :  { %v935_v56 = vmax.f32 %v933_v47, %v934_v51  ;;  %v958_v57 = vrot.slane %v957_v52, 1 }
 0x2a7   :  { %v964_v58 = vrot.slane %v963_v55, 1  ;;  %v941_v59 = vmax.f32 %v939_v49, %v940_v53 }
 0x2a8   :  { %v978_v61 = vpack.c.bf16 %v935_v56, %v935_v56  ;;  %v959_v62 = vmax.f32 %v957_v52, %v958_v57  ;;  %v2032_v52 = vld [vmem:[#allocation6 + $0x180] ss:$8 sps:$4 sm:$0xff]   ;;  %v2037_v56 = vld [vmem:[#allocation6 + $0x194] ss:$8 sps:$4 sm:$0xff]  }
 0x2a9   :  { %v965_v63 = vmax.f32 %v963_v55, %v964_v58  ;;  %v979_v0 = vpack.c.bf16 %v941_v59, %v941_v59 }
 0x2aa   :  { %v982_v1 = vpack.c.bf16 %v959_v62, %v959_v62  ;;  %v1070_v3 = vunpack.c.l.b16 %v978_v61 }
 0x2ab   :  { %v983_v2 = vpack.c.bf16 %v965_v63, %v965_v63  ;;  %v1071_v5 = vunpack.c.l.b16 %v979_v0  ;;  %v2035_v0 = vld [vmem:[#allocation6 + $0x190] ss:$8 sps:$4 sm:$0xff]  }
 0x2ac   :  { %v1074_v4 = vunpack.c.l.b16 %v982_v1 }
 0x2ad   :  { %v1075_v6 = vunpack.c.l.b16 %v983_v2 }
 0x2ae   :  { %v1079_v7 = vsel %vm1078_vm5, %v1074_v4, %v1070_v3  ;;  %v2040_v3 = vld [vmem:[#allocation6 + $0x1a4] ss:$8 sps:$4 sm:$0xff]  }
 0x2af   :  { %v1080_v42 = vsel %vm1078_vm5, %v1075_v6, %v1071_v5  ;;  %v1083_v8 = vpack.c.b16 %v1079_v7, %v1079_v7 }
 0x2b0   :  { %v1084_v36 = vpack.c.b16 %v1080_v42, %v1080_v42 }
 0x2b2   :  { %1443 = vmatprep.mubr.bf16.mxu1 %v1084_v36 }
 0x2b3   :  { %1444 = vmatmul.mubr.bf16.vlgmr.msra.gmra.mrb[0].mxu1 %v1083_v8 }
 0x2b4   :  { %1453 = vmatpush1.bf16.msra.mxu1 %v2008_v54  ;;  %v2038_v54 = vld [vmem:[#allocation6 + $0x1a0] ss:$8 sps:$4 sm:$0xff]  }
 0x2b5   :  { %1454 = vmatprep.subr.bf16.mxu1 %v2013_v9 }
 0x2b8   :  { %1455 = vmatpush1.bf16.msra.mxu1 %v2011_v10  ;;  %v2043_v10 = vld [vmem:[#allocation6 + $0x1b4] ss:$8 sps:$4 sm:$0xff]  }
 0x2b9   :  { %1456 = vmatprep.subr.bf16.mxu1 %v2016_v11 }
 0x2bc   :  { %1457 = vmatpush1.bf16.msra.mxu1 %v2014_v12 }
 0x2bd   :  { %1458 = vmatprep.subr.bf16.mxu1 %v2019_v13 }
 0x2c0   :  { %1459 = vmatpush1.bf16.msra.mxu1 %v2017_v14 }
 0x2c1   :  { %1460 = vmatprep.subr.bf16.mxu1 %v2022_v15  ;;  %v2041_v15 = vld [vmem:[#allocation6 + $0x1b0] ss:$8 sps:$4 sm:$0xff]  }
 0x2c4   :  { %1461 = vmatpush1.bf16.msra.mxu1 %v2020_v16 }
 0x2c5   :  { %1462 = vmatprep.subr.bf16.mxu1 %v2025_v20  ;;  %v2046_v20 = vld [vmem:[#allocation6 + $0x1c4] ss:$8 sps:$4 sm:$0xff]  }
 0x2c7   :  { %v913_v26 = vpop.f32.mrb[8].mxu0 }
 0x2c8   :  { %v914_v27 = vadd.f32 %v913_v26, %v581_v22  ;;  %v915_v28 = vpop.f32.mrb[9].mxu0  ;;  %1463 = vmatpush1.bf16.msra.mxu1 %v2023_v23  ;;  %v2047_v26 = vld [vmem:[#allocation6 + $0x1d0] ss:$8 sps:$4 sm:$0xff]  }
 0x2c9   :  { %v916_v30 = vadd.f32 %v915_v28, %v585_v24  ;;  %v917_v31 = vpop.f32.mrb[10].mxu0  ;;  %1464 = vmatprep.subr.bf16.mxu1 %v2028_v25  ;;  %v2049_v25 = vld [vmem:[#allocation6 + $0x1d4] ss:$8 sps:$4 sm:$0xff]   ;;  %v2050_v28 = vld [vmem:[#allocation6 + $0x1e0] ss:$8 sps:$4 sm:$0xff]  }
 0x2ca   :  { %v924_v33 = vmax.f32 %v914_v27, 0.0  ;;  %v918_v34 = vadd.f32 %v917_v31, %v581_v22  ;;  %v919_v35 = vpop.f32.mrb[11].mxu0  ;;  %v2052_v27 = vld [vmem:[#allocation6 + $0x1e4] ss:$8 sps:$4 sm:$0xff]  }
 0x2cb   :  { %v925_v37 = vmax.f32 %v916_v30, 0.0  ;;  %v920_v38 = vadd.f32 %v919_v35, %v585_v24  ;;  %v2044_v24 = vld [vmem:[#allocation6 + $0x1c0] ss:$8 sps:$4 sm:$0xff]   ;;  %v2053_v30 = vld [vmem:[#allocation6 + $0x1f0] ss:$8 sps:$4 sm:$0xff]  }
 0x2cc   :  { %v942_v39 = vrot.slane %v924_v33, 4  ;;  %v928_v40 = vmax.f32 %v918_v34, 0.0  ;;  %1465 = vmatpush1.bf16.msra.mxu1 %v2026_v29  ;;  %v2055_v29 = vld [vmem:[#allocation6 + $0x1f4] ss:$8 sps:$4 sm:$0xff]   ;;  %v2070_v34 = vld [vmem:[%s2418_s7 + $0x78] sm:$0xff]  }
 0x2cd   :  { %v948_v19 = vrot.slane %v925_v37, 4  ;;  %v929_v45 = vmax.f32 %v920_v38, 0.0  ;;  %1466 = vmatprep.subr.bf16.mxu1 %v2031_v32  ;;  %v2068_v32 = vld [vmem:[%s2418_s7 + $0x70] sm:$0xff]   ;;  %v2071_v35 = vld [vmem:[%s2418_s7 + $0x38] sm:$0xff]  }
 0x2ce   :  { %v943_v46 = vmax.f32 %v924_v33, %v942_v39  ;;  %v966_v47 = vrot.slane %v928_v40, 4  ;;  %v2069_v33 = vld [vmem:[%s2418_s7 + $0x30] sm:$0xff]   ;;  %1846 = vmatprep.subr.bf16.mxu0 %v2068_v32 }
 0x2cf   :  { %v949_v48 = vmax.f32 %v925_v37, %v948_v19  ;;  %v972_v49 = vrot.slane %v929_v45, 4  ;;  %1847 = vmatpush3.bf16.msra.mxu0 %v2069_v33  ;;  %v1050_v37 = vld [vmem:[%s2417_s6] sm:$0x3] }
 0x2d0   :  { %v944_v50 = vrot.slane %v943_v46, 2  ;;  %v967_v51 = vmax.f32 %v928_v40, %v966_v47  ;;  %1467 = vmatpush1.bf16.msra.mxu1 %v2029_v43  ;;  %1848 = vmatprep.subr.bf16.mxu0 %v2070_v34  ;;  %v1055_v38 = vrot.slane %v1050_v37, %v572_v18  ;;  %v1059_v39 = vrot.slane %v1050_v37, %v576_v60  ;;  %v1811_v18 = vld [vmem:[%s2419_s8] ss:$0 sm:$0xff] }
 0x2d1   :  { %v950_v53 = vrot.slane %v949_v48, 2  ;;  %v973_v55 = vmax.f32 %v929_v45, %v972_v49  ;;  %1468 = vmatprep.subr.bf16.mxu1 %v2034_v44 }
 0x2d2   :  { %v945_v57 = vmax.f32 %v943_v46, %v944_v50  ;;  %v968_v58 = vrot.slane %v967_v51, 2 }
 0x2d3   :  { %v951_v59 = vmax.f32 %v949_v48, %v950_v53  ;;  %v974_v61 = vrot.slane %v973_v55, 2  ;;  %1849 = vmatpush3.bf16.msra.mxu0 %v2071_v35 }
 0x2d4   :  { %v946_v62 = vrot.slane %v945_v57, 1  ;;  %v969_v63 = vmax.f32 %v967_v51, %v968_v58  ;;  %1469 = vmatpush1.bf16.msra.mxu1 %v2032_v52 }
 0x2d5   :  { %v952_v1 = vrot.slane %v951_v59, 1  ;;  %v975_v2 = vmax.f32 %v973_v55, %v974_v61  ;;  %1470 = vmatprep.subr.bf16.mxu1 %v2037_v56 }
 0x2d6   :  { %v947_v4 = vmax.f32 %v945_v57, %v946_v62  ;;  %v970_v5 = vrot.slane %v969_v63, 1 }
 0x2d7   :  { %v953_v6 = vmax.f32 %v951_v59, %v952_v1  ;;  %v976_v7 = vrot.slane %v975_v2, 1 }
 0x2d8   :  { %v980_v42 = vpack.c.bf16 %v947_v4, %v947_v4  ;;  %v971_v36 = vmax.f32 %v969_v63, %v970_v5  ;;  %1471 = vmatpush1.bf16.msra.mxu1 %v2035_v0 }
 0x2d9   :  { %v981_v8 = vpack.c.bf16 %v953_v6, %v953_v6  ;;  %v977_v9 = vmax.f32 %v975_v2, %v976_v7  ;;  %1472 = vmatprep.subr.bf16.mxu1 %v2040_v3 }
 0x2da   :  { %v984_v11 = vpack.c.bf16 %v971_v36, %v971_v36  ;;  %v1072_v13 = vunpack.c.l.b16 %v980_v42 }
 0x2db   :  { %v985_v12 = vpack.c.bf16 %v977_v9, %v977_v9  ;;  %v1073_v16 = vunpack.c.l.b16 %v981_v8 }
 0x2dc   :  { %v1076_v14 = vunpack.c.l.b16 %v984_v11  ;;  %1473 = vmatpush1.bf16.msra.mxu1 %v2038_v54 }
 0x2dd   :  { %v1077_v17 = vunpack.c.l.b16 %v985_v12  ;;  %1474 = vmatprep.subr.bf16.mxu1 %v2043_v10 }
 0x2de   :  { %v1081_v21 = vsel %vm1078_vm5, %v1076_v14, %v1072_v13 }
 0x2df   :  { %v1082_v22 = vsel %vm1078_vm5, %v1077_v17, %v1073_v16  ;;  %v1085_v31 = vpack.c.b16 %v1081_v21, %v1081_v21 }
 0x2e0   :  { %1475 = vmatpush1.bf16.msra.mxu1 %v2041_v15  ;;  %v1086_v23 = vpack.c.b16 %v1082_v22, %v1082_v22 }
 0x2e1   :  { %1476 = vmatprep.subr.bf16.mxu1 %v2046_v20 }
 0x2e2   :  { %1484 = vmatprep.mubr.bf16.mxu1 %v1086_v23 }
 0x2e4   :  { %1477 = vmatpush1.bf16.msra.mxu1 %v2044_v24 }
 0x2e5   :  { %1478 = vmatprep.subr.bf16.mxu1 %v2049_v25 }
 0x2e8   :  { %1479 = vmatpush1.bf16.msra.mxu1 %v2047_v26 }
 0x2e9   :  { %1480 = vmatprep.subr.bf16.mxu1 %v2052_v27 }
 0x2ec   :  { %1481 = vmatpush1.bf16.msra.mxu1 %v2050_v28 }
 0x2ed   :  { %1482 = vmatprep.subr.bf16.mxu1 %v2055_v29 }
 0x2f0   :  { %1483 = vmatpush1.bf16.msra.mxu1 %v2053_v30 }
 0x2f3   :  { %1485 = vmatmul.mubr.bf16.vlgmr.msra.gmra.mrb[0].mxu1 %v1085_v31 }
 0x3c6   :  { %v1486_v40 = vpop.f32.mrb[0].mxu1 }
 0x3c7   :  { %v1872_v43 = vadd.f32 %v1486_v40, %v1055_v38  ;;  %v1488_v19 = vpop.f32.mrb[1].mxu1 }
 0x3c8   :  { %v1873_v45 = vadd.f32 %v1488_v19, %v1059_v39  ;;  %v1490_v44 = vpop.f32.mrb[2].mxu1 }
 0x3c9   :  { %v1493_v46 = vmax.f32 %v1872_v43, 0.0  ;;  %v1491_v47 = vpop.f32.mrb[3].mxu1 }
 0x3ca   :  { %v1494_v48 = vmax.f32 %v1873_v45, 0.0 }
 0x3cb   :  { %v1495_v50 = vpack.c.bf16 %v1493_v46, %v1493_v46 }
 0x3cc   :  { %v1496_v49 = vpack.c.bf16 %v1494_v48, %v1494_v48 }
 0x3ce   :  { %1664 = vmatprep.mubr.bf16.mxu0 %v1496_v49 }
 0x3cf   :  { %1665 = vmatmul.mubr.bf16.vlgmr.msra.gmra.mrb[12].mxu0 %v1495_v50 }
 0x4a2   :  { %v1850_v51 = vpop.f32.mrb[12].mxu0 }
 0x4a3   :  { %v1851_v52 = vpop.f32.mrb[13].mxu0 }
 0x4a4   :  { %v1852_v41 = vadd.f32 %v1851_v52, %v1850_v51  ;;  %v1853_v60 = vpop.f32.mrb[14].mxu0 }
 0x4a5   :  { %v1854_v53 = vpop.f32.mrb[15].mxu0 }
 0x4a6   :  { %v1667_v55 = vadd.f32 %v1852_v41, %v1811_v18 }
 0x4a8   :  { %1672 = vst [vmem:[#allocation8] sm:$0x3] %v1667_v55 }
 0x4a9   :  { %2127 = shalt.err (!%p2124_p6)
}
 0x4aa   :  { %s2128_s8 = scalar_lea.hbm %s2420_s9, 32 }
 0x4ab   :  { %p2129_p7 = scmp.ne.s32.totalorder %s2420_s9, %s2128_s8  ;;  %p2132_p8 = scmp.lt.u32.totalorder %s2128_s8, %s2420_s9 }
 0x4ad   :  { %p2134_p9 = pnand %p2132_p8, %p2129_p7 }
 0x4af   :  { %2137 = shalt.err (!%p2134_p9)
}
 0x4b0   :  { %1682 = dma.vmem_to_hbm [thread:$0]  %s1680_s14, 32, %s2420_s9, [#allocation5]  }
 0x4b1   :  { %2142 = dma.done.wait [#allocation5], 32  }
 0x4b2   :  { %2143 = vsyncadd [#allocation5], 4294967264 }
 0x4b3   :  { %1686 = vsyncpa [#allocation4], 1 }
 0x4b4   :  { %1687 = vsyncpa [#allocation7], 1 }
 0x4b5   :  { %1688 = vsyncpa [#allocation5], 1 }

</bundles_post_ra>
